<compile_context>
chip_gen: v6e
topology: v6e:2x2x1
jax: 0.10.0
libtpu: 0.0.40
codegen_flags: <defaults>
</compile_context>

<pallas_src>
import functools
import math

import jax
import jax.numpy as jnp
from jax.experimental import pallas as pl
from jax.experimental.pallas import tpu as pltpu


def _recon5_kernel(x_ref, wqkv_ref, bqkv_ref, wf_ref, bf_ref, mask_ref, o_ref, *,
                   n_sub, sub, dim):
    """One grid step = an (M, C) token slab, M = n_sub * sub rows."""
    cd = x_ref.dtype  # MXU operand dtype (bf16 by default; f32 accumulation everywhere)

    # Fused Q/K/V projection for the whole slab: one weight push, f32 acc + f32 bias.
    qkv = jnp.dot(x_ref[...], wqkv_ref[...],
                  preferred_element_type=jnp.float32) + bqkv_ref[...]   # (M, 3C) f32

    mask = mask_ref[...]      # (sub, sub) f32 additive block-diagonal mask
    wf = wf_ref[...]          # hoisted weight / bias loads (loop-invariant)
    bf = bf_ref[...]

    for si in range(n_sub):   # statically unrolled; n_sub is small (<= ~16)
        blk = qkv[si * sub:(si + 1) * sub, :]        # (sub, 3C) static slice
        q = blk[:, :dim].astype(cd)                  # 1/sqrt(C) folded into W_q, b_q
        k = blk[:, dim:2 * dim].astype(cd)
        v = blk[:, 2 * dim:].astype(cd)

        # Dense (sub, sub) scores; the block-diagonal mask makes the softmax
        # exactly the per-batch-element softmax(q k^T / sqrt(C)).
        s = jax.lax.dot_general(q, k, (((1,), (1,)), ((), ())),         # NT-form
                                preferred_element_type=jnp.float32)     # (sub, sub) f32
        s = s + mask
        s = s - jnp.max(s, axis=-1, keepdims=True)
        p = jnp.exp(s)
        # approx reciprocal runs on the EUP slot; ~1e-4 relative error, covered
        # by the test tolerances (use an explicit divide for exact parity).
        p = p * pl.reciprocal(jnp.sum(p, axis=-1, keepdims=True), approx=True)

        ctx = jnp.dot(p.astype(cd), v, preferred_element_type=jnp.float32)   # (sub, C)
        out = jnp.dot(ctx.astype(cd), wf,
                      preferred_element_type=jnp.float32) + bf               # (sub, F) f32
        o_ref[si * sub:(si + 1) * sub, :] = out.astype(o_ref.dtype)


def _cdiv(a, b):
    return -(-a // b)


def _round_up(a, b):
    return _cdiv(a, b) * b


def _device_kind():
    try:
        return jax.devices()[0].device_kind.lower()
    except Exception:
        return ""


def _pick_tiles(batch, n_tokens):
    """Returns (tb, sub_tb): batch elements per grid step and per dense
    attention sub-block."""
    kind = _device_kind()
    v6plus = ("v6" in kind) or ("v7" in kind) or ("7x" in kind)
    dual_tc = ("v7" in kind) or ("7x" in kind)
    target_m = 2048                       # rows per grid step (HBM-roofline / overhead regime)
    target_sub = 256 if v6plus else 128   # rows per dense attention block (MXU-native dim)

    # sub_tb*N must be sublane(8)-aligned so per-sub slices/stores stay trivial.
    align = 8 // math.gcd(n_tokens, 8)
    sub_tb = max(align, (max(1, target_sub // n_tokens) // align) * align)

    if batch <= sub_tb:
        return batch, batch               # single grid step, single attention block

    # Grid-step batch size: a multiple of sub_tb near target_m / N rows.
    tb = max(sub_tb, (max(1, target_m // n_tokens) // sub_tb) * sub_tb)
    tb = min(tb, _round_up(batch, sub_tb))          # don't pad wildly past the real batch
    if dual_tc and _cdiv(batch, tb) < 2:
        # Keep >= 2 grid steps so both TensorCores get work (dimension_semantics parallel).
        tb = max(sub_tb, _round_up(_cdiv(batch, 2), sub_tb))
    return tb, sub_tb


def reconstruction_method5(x, params, patch_size, output_channels, *,
                           compute_dtype=jnp.bfloat16, out_dtype=None,
                           tb=None, sub_tb=None):
    """x: (B, N, C) float32. Returns (B, N, output_channels, patch_size, patch_size)."""
    B, N, C = x.shape
    F = patch_size * patch_size * output_channels
    wq, bq, wk, bk, wv, bv, wf, bf = params
    if out_dtype is None:
        out_dtype = compute_dtype   # bf16 writeback halves output HBM traffic

    scale = 1.0 / math.sqrt(C)
    # Fold the attention scale into the query projection; fuse Q/K/V weights (C, 3C).
    wqkv_t = jnp.concatenate([(wq * scale).T, wk.T, wv.T], axis=1)      # (C, 3C)
    bqkv = jnp.concatenate([bq * scale, bk, bv]).reshape(1, 3 * C)      # (1, 3C) f32
    wf_t = wf.T                                                          # (C, F)
    bf_r = bf.reshape(1, F)                                              # (1, F) f32

    if tb is None or sub_tb is None:
        auto_tb, auto_sub = _pick_tiles(B, N)
        if tb is None:
            tb = auto_tb
        if sub_tb is None:
            sub_tb = auto_sub if tb % auto_sub == 0 else math.gcd(tb, auto_sub)
    assert tb % sub_tb == 0, (tb, sub_tb)

    # Pad the batch so any B keeps the big-slab fast path. Padded (zero) rows
    # attend only within their own block and are sliced off below.
    B_pad = _round_up(B, tb)
    if B_pad != B:
        x = jnp.pad(x, ((0, B_pad - B), (0, 0), (0, 0)))

    m = tb * N
    sub = sub_tb * N
    n_sub = tb // sub_tb
    if B_pad > tb:
        assert m % 8 == 0, (m,)   # multi-step grid needs sublane-aligned blocks

    # MXU operands stored in HBM as compute_dtype (bf16 by default — MXU-native on
    # every generation); accumulation and softmax math stay f32.
    x2 = x.reshape(B_pad * N, C).astype(compute_dtype)
    wqkv_t = wqkv_t.astype(compute_dtype)
    wf_t = wf_t.astype(compute_dtype)

    # Additive block-diagonal mask for one attention sub-slab: 0 within a batch
    # element's N tokens, -1e30 elsewhere (exp() underflows to exactly 0 in f32).
    blk_id = jnp.arange(sub, dtype=jnp.int32) // N
    mask = jnp.where(blk_id[:, None] == blk_id[None, :], 0.0, -1e30).astype(jnp.float32)

    kernel = functools.partial(_recon5_kernel, n_sub=n_sub, sub=sub, dim=C)

    out = pl.pallas_call(
        kernel,
        out_shape=jax.ShapeDtypeStruct((B_pad * N, F), out_dtype),
        grid_spec=pltpu.PrefetchScalarGridSpec(
            num_scalar_prefetch=0,
            grid=(B_pad // tb,),
            in_specs=[
                pl.BlockSpec((m, C), lambda i: (i, 0)),          # token slab
                pl.BlockSpec((C, 3 * C), lambda i: (0, 0)),      # fused QKV weight
                pl.BlockSpec((1, 3 * C), lambda i: (0, 0)),      # fused QKV bias (f32)
                pl.BlockSpec((C, F), lambda i: (0, 0)),          # final weight
                pl.BlockSpec((1, F), lambda i: (0, 0)),          # final bias (f32)
                pl.BlockSpec((sub, sub), lambda i: (0, 0)),      # block-diagonal mask (f32)
            ],
            out_specs=pl.BlockSpec((m, F), lambda i: (i, 0)),
        ),
        compiler_params=pltpu.CompilerParams(
            dimension_semantics=("parallel",),
            vmem_limit_bytes=32 * 1024 * 1024),                  # explicit headroom; blocks are <1 MiB
    )(x2, wqkv_t, bqkv, wf_t, bf_r, mask)

    # nn.Unflatten(2, (output_channels, patch_size, patch_size)) — reshape glue.
    out = out.reshape(B_pad, N, output_channels, patch_size, patch_size)
    return out[:B]


def _init_linear(key, in_dim, out_dim):
    """Deterministic init matching nn.Linear's default bounds."""
    kw, kb = jax.random.split(key)
    bound = 1.0 / math.sqrt(in_dim)
    w = jax.random.uniform(kw, (out_dim, in_dim), jnp.float32, -bound, bound)
    b = jax.random.uniform(kb, (out_dim,), jnp.float32, -bound, bound)
    return w, b


def _reference(x, params):
    """Pure-JAX reference of the PyTorch forward (pre-unflatten), all f32."""
    wq, bq, wk, bk, wv, bv, wf, bf = params
    B, N, C = x.shape
    q = x @ wq.T + bq
    k = x @ wk.T + bk
    v = x @ wv.T + bv
    attn = jax.nn.softmax((q @ jnp.swapaxes(k, -2, -1)) / math.sqrt(C), axis=-1)
    ctx = attn @ v
    return ctx @ wf.T + bf


if __name__ == "__main__":
    # Small shapes consistent with the module.
    B, N = 2, 8                    # batch, num tokens (patches)
    decoder_dim = 32               # C
    patch_size = 4
    output_channels = 3

    root = jax.random.PRNGKey(0)
    kx, kq, kk, kv, kf, kx2 = jax.random.split(root, 6)

    x = jax.random.normal(kx, (B, N, decoder_dim), jnp.float32)

    wq, bq = _init_linear(kq, decoder_dim, decoder_dim)
    wk, bk = _init_linear(kk, decoder_dim, decoder_dim)
    wv, bv = _init_linear(kv, decoder_dim, decoder_dim)
    wf, bf = _init_linear(kf, decoder_dim, patch_size * patch_size * output_channels)
    params = (wq, bq, wk, bk, wv, bv, wf, bf)

    tol = 5e-2  # bf16 operands + bf16 output vs all-f32 reference

    out = reconstruction_method5(x, params, patch_size, output_channels)
    out = jax.block_until_ready(out)
    assert out.shape == (B, N, output_channels, patch_size, patch_size), out.shape
    ref = _reference(x, params).reshape(B, N, output_channels, patch_size, patch_size)
    out_f32 = out.astype(jnp.float32)
    assert jnp.allclose(out_f32, ref, atol=tol, rtol=tol), \
        float(jnp.max(jnp.abs(out_f32 - ref)))

    # Second check: batch that doesn't divide tb -> padding, multi-step grid,
    # and the multi-sub-slab (block-diagonal) loop inside the kernel.
    B2 = 5
    x_b = jax.random.normal(kx2, (B2, N, decoder_dim), jnp.float32)
    out2 = reconstruction_method5(x_b, params, patch_size, output_channels,
                                  tb=2, sub_tb=1)
    out2 = jax.block_until_ready(out2)
    ref2 = _reference(x_b, params).reshape(B2, N, output_channels, patch_size, patch_size)
    out2_f32 = out2.astype(jnp.float32)
    assert out2.shape == ref2.shape, out2.shape
    assert jnp.allclose(out2_f32, ref2, atol=tol, rtol=tol), \
        float(jnp.max(jnp.abs(out2_f32 - ref2)))

    print("KERNEL_OK")
</pallas_src>

<mosaic_0001>
module attributes {stable_mosaic.version = 11 : i64} {
  func.func @_recon5_kernel(%arg0: i32, %arg1: memref<16x32xbf16, #tpu.memory_space<vmem>>, %arg2: memref<32x96xbf16, #tpu.memory_space<vmem>>, %arg3: memref<1x96xf32, #tpu.memory_space<vmem>>, %arg4: memref<32x48xbf16, #tpu.memory_space<vmem>>, %arg5: memref<1x48xf32, #tpu.memory_space<vmem>>, %arg6: memref<16x16xf32, #tpu.memory_space<vmem>>, %arg7: memref<16x48xbf16, #tpu.memory_space<vmem>>) attributes {dimension_semantics = [#tpu.dimension_semantics<parallel>], iteration_bounds = array<i64: 1>, scalar_prefetch = 0 : i64, scratch_operands = 0 : i64, tpu.core_type = #tpu.core_type<tc>, window_params = [{transform_indices = @transform_0, window_bounds = array<i64: 16, 32>}, {pipeline_mode = #tpu.pipeline_mode<synchronous>, transform_indices = @transform_1, window_bounds = array<i64: 32, 96>}, {pipeline_mode = #tpu.pipeline_mode<synchronous>, transform_indices = @transform_2, window_bounds = array<i64: 1, 96>}, {pipeline_mode = #tpu.pipeline_mode<synchronous>, transform_indices = @transform_3, window_bounds = array<i64: 32, 48>}, {pipeline_mode = #tpu.pipeline_mode<synchronous>, transform_indices = @transform_4, window_bounds = array<i64: 1, 48>}, {pipeline_mode = #tpu.pipeline_mode<synchronous>, transform_indices = @transform_5, window_bounds = array<i64: 16, 16>}, {transform_indices = @transform_6, window_bounds = array<i64: 16, 48>}]} {
    %c0 = arith.constant 0 : index
    %c0_0 = arith.constant 0 : index
    %0 = vector.load %arg1[%c0, %c0_0] : memref<16x32xbf16, #tpu.memory_space<vmem>>, vector<16x32xbf16>
    %c0_1 = arith.constant 0 : index
    %c0_2 = arith.constant 0 : index
    %1 = vector.load %arg2[%c0_1, %c0_2] : memref<32x96xbf16, #tpu.memory_space<vmem>>, vector<32x96xbf16>
    %cst = arith.constant dense<0.000000e+00> : vector<16x96xf32>
    %2 = tpu.matmul %0, %1, %cst {dimension_numbers = #tpu.dot_dimension_numbers<[1], [0], [0], [1], [0, 0, 1, 1], [], []>} : vector<16x32xbf16>, vector<32x96xbf16>, vector<16x96xf32> -> vector<16x96xf32>
    %c0_3 = arith.constant 0 : index
    %c0_4 = arith.constant 0 : index
    %3 = vector.load %arg3[%c0_3, %c0_4] : memref<1x96xf32, #tpu.memory_space<vmem>>, vector<1x96xf32>
    %4 = vector.broadcast %3 : vector<1x96xf32> to vector<16x96xf32>
    %5 = arith.addf %2, %4 : vector<16x96xf32>
    %c0_5 = arith.constant 0 : index
    %c0_6 = arith.constant 0 : index
    %6 = vector.load %arg6[%c0_5, %c0_6] : memref<16x16xf32, #tpu.memory_space<vmem>>, vector<16x16xf32>
    %c0_7 = arith.constant 0 : index
    %c0_8 = arith.constant 0 : index
    %7 = vector.load %arg4[%c0_7, %c0_8] : memref<32x48xbf16, #tpu.memory_space<vmem>>, vector<32x48xbf16>
    %c0_9 = arith.constant 0 : index
    %c0_10 = arith.constant 0 : index
    %8 = vector.load %arg5[%c0_9, %c0_10] : memref<1x48xf32, #tpu.memory_space<vmem>>, vector<1x48xf32>
    %9 = vector.extract_strided_slice %5 {offsets = [0, 0], sizes = [16, 32], strides = [1, 1]} : vector<16x96xf32> to vector<16x32xf32>
    %10 = arith.truncf %9 : vector<16x32xf32> to vector<16x32xbf16>
    %11 = vector.extract_strided_slice %5 {offsets = [0, 32], sizes = [16, 32], strides = [1, 1]} : vector<16x96xf32> to vector<16x32xf32>
    %12 = arith.truncf %11 : vector<16x32xf32> to vector<16x32xbf16>
    %13 = vector.extract_strided_slice %5 {offsets = [0, 64], sizes = [16, 32], strides = [1, 1]} : vector<16x96xf32> to vector<16x32xf32>
    %14 = arith.truncf %13 : vector<16x32xf32> to vector<16x32xbf16>
    %cst_11 = arith.constant dense<0.000000e+00> : vector<16x16xf32>
    %15 = tpu.matmul %10, %12, %cst_11 {dimension_numbers = #tpu.dot_dimension_numbers<[1], [1], [0], [0], [0, 0, 1, 0], [], []>} : vector<16x32xbf16>, vector<16x32xbf16>, vector<16x16xf32> -> vector<16x16xf32>
    %16 = arith.addf %15, %6 : vector<16x16xf32>
    %cst_12 = arith.constant dense<0xFF800000> : vector<16xf32>
    %17 = vector.multi_reduction <maximumf>, %16, %cst_12 [1] : vector<16x16xf32> to vector<16xf32>
    %18 = vector.shape_cast %17 : vector<16xf32> to vector<16x1xf32>
    %19 = vector.broadcast %18 : vector<16x1xf32> to vector<16x16xf32>
    %20 = arith.subf %16, %19 : vector<16x16xf32>
    %21 = math.exp %20 : vector<16x16xf32>
    %cst_13 = arith.constant dense<0.000000e+00> : vector<16xf32>
    %22 = vector.multi_reduction <add>, %21, %cst_13 [1] : vector<16x16xf32> to vector<16xf32>
    %23 = vector.shape_cast %22 : vector<16xf32> to vector<16x1xf32>
    %24 = tpu.reciprocal %23 {approx = true} : vector<16x1xf32> -> vector<16x1xf32>
    %25 = vector.broadcast %24 : vector<16x1xf32> to vector<16x16xf32>
    %26 = arith.mulf %21, %25 : vector<16x16xf32>
    %27 = arith.truncf %26 : vector<16x16xf32> to vector<16x16xbf16>
    %cst_14 = arith.constant dense<0.000000e+00> : vector<16x32xf32>
    %28 = tpu.matmul %27, %14, %cst_14 {dimension_numbers = #tpu.dot_dimension_numbers<[1], [0], [0], [1], [0, 0, 1, 1], [], []>} : vector<16x16xbf16>, vector<16x32xbf16>, vector<16x32xf32> -> vector<16x32xf32>
    %29 = arith.truncf %28 : vector<16x32xf32> to vector<16x32xbf16>
    %cst_15 = arith.constant dense<0.000000e+00> : vector<16x48xf32>
    %30 = tpu.matmul %29, %7, %cst_15 {dimension_numbers = #tpu.dot_dimension_numbers<[1], [0], [0], [1], [0, 0, 1, 1], [], []>} : vector<16x32xbf16>, vector<32x48xbf16>, vector<16x48xf32> -> vector<16x48xf32>
    %31 = vector.broadcast %8 : vector<1x48xf32> to vector<16x48xf32>
    %32 = arith.addf %30, %31 : vector<16x48xf32>
    %33 = arith.truncf %32 : vector<16x48xf32> to vector<16x48xbf16>
    %c0_16 = arith.constant 0 : index
    %c0_17 = arith.constant 0 : index
    %34 = vector.load %arg7[%c0_16, %c0_17] : memref<16x48xbf16, #tpu.memory_space<vmem>>, vector<16x48xbf16>
    tpu.vector_store %arg7[%c0_16, %c0_17], %33 {strides = array<i32>} : memref<16x48xbf16, #tpu.memory_space<vmem>>, vector<16x48xbf16>,
    return
  }
  func.func @transform_0(%arg0: i32) -> (i32, i32) {
    %c0_i32 = arith.constant 0 : i32
    %c0_i32_0 = arith.constant 0 : i32
    return %arg0, %c0_i32 : i32, i32
  }
  func.func @transform_1(%arg0: i32) -> (i32, i32) {
    %c0_i32 = arith.constant 0 : i32
    %c0_i32_0 = arith.constant 0 : i32
    %c0_i32_1 = arith.constant 0 : i32
    return %c0_i32, %c0_i32_0 : i32, i32
  }
  func.func @transform_2(%arg0: i32) -> (i32, i32) {
    %c0_i32 = arith.constant 0 : i32
    %c0_i32_0 = arith.constant 0 : i32
    %c0_i32_1 = arith.constant 0 : i32
    return %c0_i32, %c0_i32_0 : i32, i32
  }
  func.func @transform_3(%arg0: i32) -> (i32, i32) {
    %c0_i32 = arith.constant 0 : i32
    %c0_i32_0 = arith.constant 0 : i32
    %c0_i32_1 = arith.constant 0 : i32
    return %c0_i32, %c0_i32_0 : i32, i32
  }
  func.func @transform_4(%arg0: i32) -> (i32, i32) {
    %c0_i32 = arith.constant 0 : i32
    %c0_i32_0 = arith.constant 0 : i32
    %c0_i32_1 = arith.constant 0 : i32
    return %c0_i32, %c0_i32_0 : i32, i32
  }
  func.func @transform_5(%arg0: i32) -> (i32, i32) {
    %c0_i32 = arith.constant 0 : i32
    %c0_i32_0 = arith.constant 0 : i32
    %c0_i32_1 = arith.constant 0 : i32
    return %c0_i32, %c0_i32_0 : i32, i32
  }
  func.func @transform_6(%arg0: i32) -> (i32, i32) {
    %c0_i32 = arith.constant 0 : i32
    %c0_i32_0 = arith.constant 0 : i32
    return %arg0, %c0_i32 : i32, i32
  }
}

</mosaic_0001>

<bundles_post_ra>
// kernel: tpu_custom_call.1
= control target key start
LH: loop header
LB: loop body
LE: loop exit
PB: predicated region body
PF: predicated region fallthrough
CT: control target
= control target key end

     0   :  { %11 = vsyncpa [#allocation3], 0  ;;  %s657_s0 = inlined_call_operand.hbm [shape: bf16[16,32], index: 0, kind: input, shape index: {}]   ;;  %s658_s1 = inlined_call_operand.hbm [shape: bf16[32,96], index: 1, kind: input, shape index: {}]   ;;  %s659_s2 = inlined_call_operand.vmem [shape: f32[1,96], index: 2, kind: input, shape index: {}]   ;;  %s660_s3 = inlined_call_operand.hbm [shape: bf16[32,48], index: 3, kind: input, shape index: {}]   ;;  %s661_s4 = inlined_call_operand.vmem [shape: f32[1,48], index: 4, kind: input, shape index: {}]   ;;  %s662_s5 = inlined_call_operand.hbm [shape: f32[16,16], index: 5, kind: input, shape index: {}]   ;;  %s663_s6 = inlined_call_operand.hbm [shape: bf16[16,48], index: 6, kind: output, shape index: {}]  }
   0x1   :  { %12 = vsyncpa [#allocation6], 0 }
   0x2   :  { %13 = vsyncpa [#allocation9], 0 }
   0x3   :  { %14 = vsyncpa [#allocation4], 0  ;;  %s563_s21 = smov [#allocation5]   ;;  %s564_s23 = smov [#allocation2]  }
   0x4   :  { %s32_s22 = sshll.u32 %s563_s21, 4  ;;  %s20_s24 = sshll.u32 %s564_s23, 4  ;;  %s33_s22 = int_to_ptr.vmem [resolvable:$true] %s32_s22  ;;  %s21_s24 = int_to_ptr.vmem [resolvable:$true] %s20_s24 }
   0x5   :  { %s463_s25 = scalar_lea.vmem %s33_s22, 256  ;;  %p468_p1 = scmp.lt.s32.totalorder %s33_s22, %s33_s22 }
   0x6   :  { %p464_p0 = scmp.ne.s32.totalorder %s33_s22, %s463_s25  ;;  %p469_p2 = scmp.lt.s32.totalorder %s463_s25, %s463_s25 }
   0x8   :  { %p470_p3 = por %p469_p2, %p468_p1 }
   0xa   :  { %p471_p4 = pnand %p470_p3, %p464_p0 }
   0xc   :  { %474 = shalt.err (!%p471_p4)
}
   0xd   :  { %s565_s26 = smov 64   ;;  %s566_s27 = smov 4  }
   0xe   :  { %38 = dma.hbm_to_vmem [thread:$0]  %s658_s1, 256, %s33_s22, [#allocation6], %s565_s26, %s565_s26, %s566_s27  }
   0xf   :  { %s483_s30 = scalar_lea.vmem %s21_s24, 128  ;;  %p488_p6 = scmp.lt.s32.totalorder %s21_s24, %s21_s24 }
  0x10   :  { %p484_p5 = scmp.ne.s32.totalorder %s21_s24, %s483_s30  ;;  %p489_p7 = scmp.lt.s32.totalorder %s483_s30, %s483_s30 }
  0x12   :  { %p490_p8 = por %p489_p7, %p488_p6 }
  0x14   :  { %p491_p9 = pnand %p490_p8, %p484_p5 }
  0x16   :  { %494 = shalt.err (!%p491_p9)
}
  0x17   :  { %26 = dma.hbm_to_vmem [thread:$0]  %s657_s0, 128, %s21_s24, [#allocation3], %s565_s26, %s565_s26, %s566_s27  }
  0x18   :  { %s567_s9 = smov [#allocation7]   ;;  %s568_s11 = smov [#allocation8]  }
  0x19   :  { %s46_s10 = sshll.u32 %s567_s9, 4  ;;  %s60_s12 = sshll.u32 %s568_s11, 4  ;;  %s47_s10 = int_to_ptr.vmem [resolvable:$true] %s46_s10  ;;  %s61_s12 = int_to_ptr.vmem [resolvable:$true] %s60_s12 }
  0x1a   :  { %s503_s1 = scalar_lea.vmem %s47_s10, 256  ;;  %p508_p11 = scmp.lt.s32.totalorder %s47_s10, %s47_s10 }
  0x1b   :  { %p504_p10 = scmp.ne.s32.totalorder %s47_s10, %s503_s1  ;;  %p509_p12 = scmp.lt.s32.totalorder %s503_s1, %s503_s1 }
  0x1d   :  { %p510_p13 = por %p509_p12, %p508_p11 }
  0x1f   :  { %p511_p0 = pnand %p510_p13, %p504_p10 }
  0x21   :  { %514 = shalt.err (!%p511_p0)
}
  0x22   :  { %52 = dma.hbm_to_vmem [thread:$0]  %s660_s3, 256, %s47_s10, [#allocation6], %s565_s26, %s565_s26, %s566_s27  }
  0x23   :  { %s523_s0 = scalar_lea.vmem %s61_s12, 256  ;;  %p528_p2 = scmp.lt.s32.totalorder %s61_s12, %s61_s12 }
  0x24   :  { %p524_p1 = scmp.ne.s32.totalorder %s61_s12, %s523_s0  ;;  %p529_p3 = scmp.lt.s32.totalorder %s523_s0, %s523_s0 }
  0x26   :  { %p530_p4 = por %p529_p3, %p528_p2 }
  0x28   :  { %p531_p5 = pnand %p530_p4, %p524_p1 }
  0x2a   :  { %534 = shalt.err (!%p531_p5)
}
  0x2b   :  { %s569_s15 = smov 128   ;;  %s570_s16 = smov 8  }
  0x2c   :  { %66 = dma.hbm_to_vmem [thread:$0]  %s662_s5, 256, %s61_s12, [#allocation9], %s569_s15, %s569_s15, %s570_s16  }
  0x2d   :  { %555 = dma.done.wait [#allocation3], 128  }
  0x2e   :  { %556 = vsyncadd [#allocation3], 4294967168 }
  0x2f   :  { %557 = dma.done.wait [#allocation6], 512  }
  0x30   :  { %558 = vsyncadd [#allocation6], 4294966784 }
  0x31   :  { %559 = dma.done.wait [#allocation9], 256  }
  0x32   :  { %560 = vsyncadd [#allocation9], 4294967040  ;;  %v571_v0 = vmov 0.0   ;;  %vm572_vm0 = vmmov 0   ;;  %v442_v1 = vld [vmem:[#allocation5 + $0x8] sm:$0xff]   ;;  %v443_v2 = vld [vmem:[#allocation5] sm:$0xff]  }
  0x33   :  { %402 = vmatprep.subr.bf16.mxu0 %v571_v0  ;;  %406 = vmatprep.mubr.msk.bf16.mxu0 %vm572_vm0, %v571_v0  ;;  %v444_v3 = vld [vmem:[#allocation2] sm:$0xff]   ;;  %vm110_vm1 = vcmask 261120   ;;  %s573_s19 = smov 96   ;;  %v155_v14 = vld [vmem:[#allocation8] sm:$0xff]  ;;  %vm213_vm2 = vcmask 130048   ;;  %v156_v18 = vld [vmem:[#allocation8 + $0x8] sm:$0xff] }
  0x34   :  { %410 = vmatprep.subr.bf16.mxu1 %v571_v0  ;;  %412 = vmatprep.mubr.msk.bf16.mxu1 %vm572_vm0, %v571_v0  ;;  %v377_v5 = vld [vmem:[%s659_s2] ss:$0 sm:$0xff]  ;;  %v446_v43 = vld [vmem:[#allocation7] sm:$0xff]   ;;  %vm355_vm3 = vcmask 388096   ;;  %s574_s21 = smov [#allocation10]  }
  0x35   :  { %403 = vmatpush3.bf16.msra.mxu0 %v442_v1  ;;  %v445_v34 = vld [vmem:[#allocation7 + $0x8] sm:$0xff]   ;;  %s363_s22 = sshll.u32 %s574_s21, 4  ;;  %s364_s22 = int_to_ptr.vmem [resolvable:$true] %s363_s22 }
  0x36   :  { %404 = vmatprep.subr.bf16.mxu0 %v571_v0  ;;  %v384_v49 = vld [vmem:[%s661_s4] ss:$0 sm:$0xff]  ;;  %s535_s23 = scalar_lea.vmem %s364_s22, 128  ;;  %p540_p7 = scmp.lt.s32.totalorder %s364_s22, %s364_s22 }
  0x37   :  { %p536_p6 = scmp.ne.s32.totalorder %s364_s22, %s535_s23  ;;  %p541_p8 = scmp.lt.s32.totalorder %s535_s23, %s535_s23 }
  0x39   :  { %405 = vmatpush3.bf16.msra.mxu0 %v443_v2  ;;  %p542_p9 = por %p541_p8, %p540_p7 }
  0x3a   :  { %416 = vmatprep.subr.bf16.mxu0 %v571_v0 }
  0x3b   :  { %p543_p10 = pnand %p542_p9, %p536_p6 }
  0x3c   :  { %407 = vmatmul.mubr.msk.bf16.vlgmr.msra.gmra.mxu0 %vm110_vm1, %v444_v3 }
  0x3d   :  { %418 = vmatprep.mubr.msk.bf16.mxu0 %vm572_vm0, %v571_v0 }
  0xfc   :  { %v148_v4 = vpop.f32.mrf.mxu0 }
  0xfd   :  { %v149_v8 = vadd.f32 %v377_v5, %v148_v4 }
  0xfe   :  { %v408_v6 = vpop.f32.mrf.mxu0 }
 0x100   :  { %v151_v7 = vpop.f32.mrf.mxu0 }
 0x101   :  { %v152_v9 = vadd.f32 %v377_v5, %v151_v7 }
 0x102   :  { %v409_v10 = vpop.f32.mrf.mxu0 }
 0x103   :  { %v162_v11 = vpack.c.bf16 %v152_v9, %v149_v8 }
 0x105   :  { %164 = vrot.lane.b32.xlu0 %v162_v11, %s573_s19 }
 0x177   :  { %v165_v12 = vpop.permute.xlu0 %164 }
 0x178   :  { %v170_v13 = vsel %vm110_vm1, %v165_v12, 0 }
 0x179   :  { %411 = vmatpush3.bf16.xpose.msra.mxu1 %v170_v13 }
 0x17a   :  { %422 = vmatprep.subr.bf16.mxu1 %v571_v0 }
 0x180   :  { %413 = vmatmul.mubr.msk.bf16.vlgmr.msra.gmra.mxu1 %vm110_vm1, %v162_v11 }
 0x181   :  { %426 = vmatprep.mubr.msk.bf16.mxu1 %vm572_vm0, %v571_v0  ;;  %423 = vmatpush3.bf16.msra.mxu1 %v445_v34 }
 0x182   :  { %424 = vmatprep.subr.bf16.mxu1 %v571_v0 }
 0x185   :  { %425 = vmatpush3.bf16.msra.mxu1 %v446_v43 }
 0x240   :  { %v206_v15 = vpop.f32.mrf.mxu1 }
 0x241   :  { %v207_v16 = vadd.f32 %v206_v15, %v155_v14 }
 0x242   :  { %v414_v17 = vpop.f32.mrf.mxu1 }
 0x243   :  { %v214_v19 = vsel %vm213_vm2, %v207_v16, -inf }
 0x244   :  { %215 = vmax.xlane.f32.xlu0 %v214_v19  ;;  %v209_v20 = vpop.f32.mrf.mxu1 }
 0x245   :  { %v210_v21 = vadd.f32 %v209_v20, %v156_v18 }
 0x246   :  { %v415_v22 = vpop.f32.mrf.mxu1 }
 0x247   :  { %v217_v23 = vsel %vm213_vm2, %v210_v21, -inf }
 0x248   :  { %218 = vmax.xlane.f32.xlu1 %v217_v23 }
 0x2cd   :  { %v216_v24 = vpop.xlane.xlu0 %215 }
 0x2ce   :  { %v220_v25 = vsub.f32 %v207_v16, %v216_v24 }
 0x2d0   :  { %v222_v26 = vmul.f32 1.442695, %v220_v25 }
 0x2d1   :  { %v219_v27 = vpop.xlane.xlu1 %218 }
 0x2d2   :  { %447 = vpow2.f32 %v222_v26  ;;  %v221_v28 = vsub.f32 %v210_v21, %v219_v27 }
 0x2d4   :  { %v224_v29 = vmul.f32 1.442695, %v221_v28 }
 0x2d6   :  { %449 = vpow2.f32 %v224_v29 }
 0x2df   :  { %v448_v30 = vpop.eup %447 }
 0x2e0   :  { %v226_v31 = vsel %vm213_vm2, %v448_v30, 0.0 }
 0x2e1   :  { %227 = vadd.xlane.f32.xlu1 %v226_v31 }
 0x2e3   :  { %v450_v32 = vpop.eup %449 }
 0x2e4   :  { %v229_v33 = vsel %vm213_vm2, %v450_v32, 0.0 }
 0x2e5   :  { %230 = vadd.xlane.f32.xlu1 %v229_v33 }
 0x2f6   :  { %237 = vrot.lane.b32.xlu1 %v162_v11, %s565_s26 }
 0x36a   :  { %v228_v35 = vpop.xlane.xlu1 %227 }
 0x36b   :  { %451 = vrcp.f32 %v228_v35 }
 0x36e   :  { %v231_v36 = vpop.xlane.xlu1 %230 }
 0x36f   :  { %453 = vrcp.f32 %v231_v36 }
 0x372   :  { %v238_v37 = vpop.permute.xlu1 %237 }
 0x373   :  { %417 = vmatpush3.bf16.msra.mxu0 %v238_v37 }
 0x378   :  { %v452_v38 = vpop.eup %451 }
 0x379   :  { %v234_v40 = vmul.f32 %v452_v38, %v448_v30 }
 0x37c   :  { %v454_v39 = vpop.eup %453 }
 0x37d   :  { %v235_v41 = vmul.f32 %v454_v39, %v450_v32 }
 0x37f   :  { %v236_v42 = vpack.c.bf16 %v235_v41, %v234_v40 }
 0x381   :  { %419 = vmatmul.mubr.msk.bf16.vlgmr.msra.gmra.mxu0 %vm213_vm2, %v236_v42 }
 0x441   :  { %v277_v44 = vpop.f32.mrf.mxu0 }
 0x443   :  { %v420_v45 = vpop.f32.mrf.mxu0 }
 0x445   :  { %v280_v46 = vpop.f32.mrf.mxu0 }
 0x446   :  { %v284_v47 = vpack.c.bf16 %v280_v46, %v277_v44 }
 0x447   :  { %v421_v48 = vpop.f32.mrf.mxu0 }
 0x448   :  { %427 = vmatmul.mubr.msk.bf16.vlgmr.msra.gmra.mxu1 %vm110_vm1, %v284_v47 }
 0x508   :  { %v340_v50 = vpop.f32.mrf.mxu1 }
 0x509   :  { %v341_v51 = vadd.f32 %v384_v49, %v340_v50 }
 0x50a   :  { %v428_v52 = vpop.f32.mrf.mxu1 }
 0x50b   :  { %v390_v53 = vpack.c.bf16 %v341_v51, %v341_v51 }
 0x50c   :  { %v343_v54 = vpop.f32.mrf.mxu1 }
 0x50d   :  { %v344_v55 = vadd.f32 %v384_v49, %v343_v54  ;;  %356 = vst.msk [vmem:[#allocation10] sm:$0xf] %vm355_vm3, %v390_v53 }
 0x50e   :  { %v429_v56 = vpop.f32.mrf.mxu1 }
 0x50f   :  { %v391_v57 = vpack.c.bf16 %v344_v55, %v344_v55 }
 0x511   :  { %357 = vst.msk [vmem:[#allocation10 + $0x4] sm:$0xf] %vm355_vm3, %v391_v57 }
 0x512   :  { %546 = shalt.err (!%p543_p10)
}
 0x513   :  { %369 = dma.vmem_to_hbm [thread:$0]  %s364_s22, 128, %s663_s6, [#allocation4], %s565_s26, %s565_s26, %s566_s27  }
 0x514   :  { %561 = dma.done.wait [#allocation4], 128  }
 0x515   :  { %562 = vsyncadd [#allocation4], 4294967168 }
 0x516   :  { %373 = vsyncpa [#allocation3], 1 }
 0x517   :  { %374 = vsyncpa [#allocation6], 1 }
 0x518   :  { %375 = vsyncpa [#allocation9], 1 }
 0x519   :  { %376 = vsyncpa [#allocation4], 1 }

</bundles_post_ra>
